<compile_context>
chip_gen: v6e
topology: v6e:2x2x1
jax: 0.10.0
libtpu: 0.0.40
codegen_flags: <defaults>
</compile_context>

<pallas_src>
import jax
import jax.numpy as jnp
from jax.experimental import pallas as pl
from jax.experimental.pallas import tpu as pltpu


_TARGET_BLOCK_PAIR_BYTES = 2 << 20   # ~2 MiB padded per (input+output) block pair
_FALLBACK_PAIR_BYTES = 4 << 20       # larger tiles once a single image is split
_MIN_GRID_STEPS = 8                  # >= 4 steps per TensorCore on v7x


def _round_up(x, m):
    return (x + m - 1) // m * m


def _sublane_multiple(dtype):
    # Second-to-last dim tiling: 8 for 32-bit, 16 for 16-bit, 32 for 8-bit.
    return max(8, 32 // jnp.dtype(dtype).itemsize)


def _padded_block_bytes(block_shape, dtype):
    """VMEM bytes of one block including (sublane, lane) tile padding."""
    dims = [int(d) for d in block_shape if d is not None]
    itemsize = jnp.dtype(dtype).itemsize
    if not dims:
        return itemsize
    if len(dims) == 1:
        return _round_up(dims[0], 128) * itemsize
    lane = _round_up(dims[-1], 128)
    sub = _round_up(dims[-2], _sublane_multiple(dtype))
    lead = 1
    for d in dims[:-2]:
        lead *= d
    return lead * sub * lane * itemsize


def _vmem_budget_and_limit():
    """(live-block budget, scoped vmem limit) derived per TPU generation."""
    try:
        cap = int(pltpu.get_tpu_info().vmem_capacity_bytes)
    except Exception:
        cap = None
    if cap is None or cap <= (64 << 20):   # v7x (64 MiB physical) or unknown
        limit = 44 << 20
    else:                                  # v5e / v6e (128 MiB physical)
        limit = 96 << 20
    return (limit * 3) // 4, limit         # leave headroom for compiler scratch


def _pick_batch_tile(n, per_image_bytes, budget):
    """Images per grid step: ~2 MiB padded blocks, within budget, >= 8 steps."""
    tb = max(1, min(_TARGET_BLOCK_PAIR_BYTES // per_image_bytes,
                    budget // (2 * per_image_bytes)))
    desired_steps = min(_MIN_GRID_STEPS, n)
    tb = max(1, min(tb, n // desired_steps, n))
    return int(tb)


def _pick_hw_tile(per_hw_bytes, hw, budget):
    """H*W tile (multiple of 128 lanes) targeting ~4 MiB padded block pairs."""
    pair_target = min(_FALLBACK_PAIR_BYTES, budget // 2)
    thw = (pair_target // per_hw_bytes) // 128 * 128
    thw = max(128, thw)
    return int(thw) if thw < hw else int(hw)


# ----------------------------- forward: NHWC -> f32 NCHW ---------------------

def _fwd_kernel_single(x_ref, o_ref):
    # x_ref: (HW_tile, C); o_ref: (C, HW_tile). Transpose in the input dtype,
    # cast to f32 on the lane-dense result (memory-bound; VPU has slack).
    o_ref[...] = x_ref[...].T.astype(jnp.float32)


def _fwd_kernel_batched(x_ref, o_ref):
    # x_ref: (TB, HW, C); o_ref: (TB, C, HW). Batched minor-dim transpose.
    o_ref[...] = jnp.transpose(x_ref[...], (0, 2, 1)).astype(jnp.float32)


def preprocess(x):
    """NHWC (any dtype) -> float32 NCHW; Pallas equivalent of Preprocess.forward."""
    n, h, w, c = x.shape
    hw = h * w
    x2 = x.reshape(n, hw, c)                      # free: H, W are contiguous
    in_dtype = x.dtype
    in_itemsize = jnp.dtype(in_dtype).itemsize

    budget, limit = _vmem_budget_and_limit()
    cost = pl.CostEstimate(flops=0, transcendentals=0,
                           bytes_accessed=int(n * hw * c * (in_itemsize + 4)))

    # Padded VMEM footprint of one image's input + output block.
    in_img = _padded_block_bytes((hw, c), in_dtype)
    out_img = _padded_block_bytes((c, hw), jnp.float32)
    per_image = in_img + out_img

    if 2 * per_image <= budget:
        # Whole image(s) per grid step; batch several small images per block.
        tb = _pick_batch_tile(n, per_image, budget)
        grid = (pl.cdiv(n, tb),)
        if tb == 1:
            kernel = _fwd_kernel_single
            in_spec = pl.BlockSpec((None, hw, c), lambda i: (i, 0, 0))
            out_spec = pl.BlockSpec((None, c, hw), lambda i: (i, 0, 0))
        else:
            kernel = _fwd_kernel_batched
            in_spec = pl.BlockSpec((tb, hw, c), lambda i: (i, 0, 0))
            out_spec = pl.BlockSpec((tb, c, hw), lambda i: (i, 0, 0))
        dims = ("parallel",)
    else:
        # One image's padded blocks exceed the budget: tile flattened H*W in
        # lane-dense multiples of 128 (padded per-H*W-element bytes below).
        per_hw = (_round_up(c, 128) * in_itemsize   # input block: c in lanes
                  + _round_up(c, 8) * 4)            # f32 output: c in sublanes
        thw = _pick_hw_tile(per_hw, hw, budget)
        grid = (n, pl.cdiv(hw, thw))
        kernel = _fwd_kernel_single
        in_spec = pl.BlockSpec((None, thw, c), lambda i, t: (i, t, 0))
        out_spec = pl.BlockSpec((None, c, thw), lambda i, t: (i, 0, t))
        dims = ("parallel", "parallel")

    out = pl.pallas_call(
        kernel,
        out_shape=jax.ShapeDtypeStruct((n, c, hw), jnp.float32),
        grid=grid,
        in_specs=[in_spec],
        out_specs=out_spec,
        compiler_params=pltpu.CompilerParams(
            dimension_semantics=dims, vmem_limit_bytes=limit),
        cost_estimate=cost,
    )(x2)
    return out.reshape(n, c, h, w)                # free: splits contiguous H*W


# ----------------------------- inverse: NCHW -> NHWC --------------------------

def _inv_kernel_single(x_ref, o_ref):
    # x_ref: (C, HW_tile); o_ref: (HW_tile, C)
    o_ref[...] = x_ref[...].T


def _inv_kernel_batched(x_ref, o_ref):
    # x_ref: (TB, C, HW); o_ref: (TB, HW, C)
    o_ref[...] = jnp.transpose(x_ref[...], (0, 2, 1))


def preprocess_inverse(x):
    """NCHW -> NHWC (same dtype); Pallas equivalent of Preprocess.inverse."""
    # TODO(synk): the (..., hw, c) output is lane-hostile for small C; staging a
    # lane-dense interleaved (hw*c) slab needs the same on-chip relayout noted
    # above, or better, fusing this permute into the consumer.
    n, c, h, w = x.shape
    hw = h * w
    x2 = x.reshape(n, c, hw)
    dtype = x.dtype
    itemsize = jnp.dtype(dtype).itemsize

    budget, limit = _vmem_budget_and_limit()
    cost = pl.CostEstimate(flops=0, transcendentals=0,
                           bytes_accessed=int(2 * n * c * hw * itemsize))

    in_img = _padded_block_bytes((c, hw), dtype)
    out_img = _padded_block_bytes((hw, c), dtype)
    per_image = in_img + out_img

    if 2 * per_image <= budget:
        tb = _pick_batch_tile(n, per_image, budget)
        grid = (pl.cdiv(n, tb),)
        if tb == 1:
            kernel = _inv_kernel_single
            in_spec = pl.BlockSpec((None, c, hw), lambda i: (i, 0, 0))
            out_spec = pl.BlockSpec((None, hw, c), lambda i: (i, 0, 0))
        else:
            kernel = _inv_kernel_batched
            in_spec = pl.BlockSpec((tb, c, hw), lambda i: (i, 0, 0))
            out_spec = pl.BlockSpec((tb, hw, c), lambda i: (i, 0, 0))
        dims = ("parallel",)
    else:
        sub = _sublane_multiple(dtype)
        per_hw = (_round_up(c, sub) * itemsize      # input block: c in sublanes
                  + _round_up(c, 128) * itemsize)   # output block: c in lanes
        thw = _pick_hw_tile(per_hw, hw, budget)
        grid = (n, pl.cdiv(hw, thw))
        kernel = _inv_kernel_single
        in_spec = pl.BlockSpec((None, c, thw), lambda i, t: (i, 0, t))
        out_spec = pl.BlockSpec((None, thw, c), lambda i, t: (i, t, 0))
        dims = ("parallel", "parallel")

    out = pl.pallas_call(
        kernel,
        out_shape=jax.ShapeDtypeStruct((n, hw, c), dtype),
        grid=grid,
        in_specs=[in_spec],
        out_specs=out_spec,
        compiler_params=pltpu.CompilerParams(
            dimension_semantics=dims, vmem_limit_bytes=limit),
        cost_estimate=cost,
    )(x2)
    return out.reshape(n, h, w, c)


if __name__ == "__main__":
    key = jax.random.PRNGKey(0)
    k1, k2, k3 = jax.random.split(key, 3)

    # Case 1: small batch -> one image per grid step (squeezed 2-D transpose).
    x1 = jax.random.uniform(k1, (2, 16, 16, 4), dtype=jnp.float32)
    out1 = jax.block_until_ready(preprocess(x1))
    ref1 = jnp.transpose(x1.astype(jnp.float32), (0, 3, 1, 2))
    assert out1.shape == (2, 4, 16, 16), out1.shape
    assert out1.dtype == jnp.float32, out1.dtype
    assert jnp.array_equal(out1, ref1), "forward (single-image path) mismatch"

    back1 = jax.block_until_ready(preprocess_inverse(out1))
    assert back1.shape == x1.shape, back1.shape
    assert jnp.array_equal(back1, x1.astype(jnp.float32)), "inverse round-trip mismatch"

    # Case 2: larger batch -> several images per grid step (batched transpose).
    x2 = jax.random.uniform(k2, (32, 16, 16, 4), dtype=jnp.float32)
    out2 = jax.block_until_ready(preprocess(x2))
    ref2 = jnp.transpose(x2.astype(jnp.float32), (0, 3, 1, 2))
    assert jnp.array_equal(out2, ref2), "forward (batched path) mismatch"

    back2 = jax.block_until_ready(preprocess_inverse(out2))
    assert jnp.array_equal(back2, x2.astype(jnp.float32)), "batched inverse mismatch"

    # Case 3: one large image -> flattened H*W tiled in 128-lane multiples
    # (partial final block exercised), for both forward and inverse.
    x3 = jax.random.uniform(k3, (1, 320, 320, 4), dtype=jnp.float32)
    out3 = jax.block_until_ready(preprocess(x3))
    ref3 = jnp.transpose(x3.astype(jnp.float32), (0, 3, 1, 2))
    assert jnp.array_equal(out3, ref3), "forward (hw-tiled path) mismatch"

    back3 = jax.block_until_ready(preprocess_inverse(out3))
    assert jnp.array_equal(back3, x3.astype(jnp.float32)), "tiled inverse mismatch"

    print("KERNEL_OK")
</pallas_src>

<mosaic_0001>
module attributes {stable_mosaic.version = 11 : i64} {
  func.func @_fwd_kernel_single(%arg0: i32, %arg1: memref<1x256x4xf32, #tpu.memory_space<vmem>>, %arg2: memref<1x4x256xf32, #tpu.memory_space<vmem>>) attributes {dimension_semantics = [#tpu.dimension_semantics<parallel>], iteration_bounds = array<i64: 2>, scalar_prefetch = 0 : i64, scratch_operands = 0 : i64, tpu.core_type = #tpu.core_type<tc>, window_params = [{transform_indices = @transform_0, window_bounds = array<i64: 1, 256, 4>}, {transform_indices = @transform_1, window_bounds = array<i64: 1, 4, 256>}]} {
    %c0 = arith.constant 0 : index
    %c0_0 = arith.constant 0 : index
    %c0_1 = arith.constant 0 : index
    %0 = vector.load %arg1[%c0, %c0_0, %c0_1] : memref<1x256x4xf32, #tpu.memory_space<vmem>>, vector<1x256x4xf32>
    %1 = vector.shape_cast %0 : vector<1x256x4xf32> to vector<256x4xf32>
    %2 = tpu.transpose %1, [1, 0] : vector<256x4xf32> -> vector<4x256xf32>
    %c0_2 = arith.constant 0 : index
    %c0_3 = arith.constant 0 : index
    %c0_4 = arith.constant 0 : index
    %3 = vector.load %arg2[%c0_2, %c0_3, %c0_4] : memref<1x4x256xf32, #tpu.memory_space<vmem>>, vector<1x4x256xf32>
    %4 = vector.shape_cast %3 : vector<1x4x256xf32> to vector<4x256xf32>
    %5 = vector.shape_cast %2 : vector<4x256xf32> to vector<1x4x256xf32>
    tpu.vector_store %arg2[%c0_2, %c0_3, %c0_4], %5 {strides = array<i32>} : memref<1x4x256xf32, #tpu.memory_space<vmem>>, vector<1x4x256xf32>,
    return
  }
  func.func @transform_0(%arg0: i32) -> (i32, i32, i32) {
    %c0_i32 = arith.constant 0 : i32
    %c0_i32_0 = arith.constant 0 : i32
    %c0_i32_1 = arith.constant 0 : i32
    return %arg0, %c0_i32, %c0_i32_0 : i32, i32, i32
  }
  func.func @transform_1(%arg0: i32) -> (i32, i32, i32) {
    %c0_i32 = arith.constant 0 : i32
    %c0_i32_0 = arith.constant 0 : i32
    %c0_i32_1 = arith.constant 0 : i32
    return %arg0, %c0_i32, %c0_i32_0 : i32, i32, i32
  }
}

</mosaic_0001>

<bundles_post_ra>
// kernel: tpu_custom_call.1
= control target key start
LH: loop header
LB: loop body
LE: loop exit
PB: predicated region body
PF: predicated region fallthrough
CT: control target
= control target key end

     0   :  { %6 = vsyncpa [#allocation3], 0  ;;  %s537_s0 = inlined_call_operand.vmem [shape: f32[2,256,4], index: 0, kind: input, shape index: {}]   ;;  %s538_s1 = inlined_call_operand.hbm [shape: f32[2,4,256], index: 1, kind: output, shape index: {}]  }
   0x1   :  { %8 = vsyncpa [#allocation3 + $0x1], 0  ;;  %s416_s6 = smov 0   ;;  %s418_s7 = smov 0  }
   0x2   :  { %s420_s8 = smov 0   ;;  %s422_s9 = smov 0  }
   0x3 LB: > { %s437_s10 = sadd.s32 4294967295, %s403_s9   ;;  %s290_s11 = sadd.s32 4294967294, %s403_s9   ;;  %s403_s9 = sphi %s422_s9, %s544_s9   ;;  %s399_s8 = sphi %s420_s8, %s543_s8   ;;  %s395_s7 = sphi %s418_s7, %s542_s7   ;;  %s391_s6 = sphi %s416_s6, %s541_s6  }
   0x4   : > { %s441_s12 = sadd.s32 1, %s403_s9   ;;  %s47_s13 = sadd.s32 1, %s399_s8 }
   0x5   : > { %s44_s14 = ssub.s32 %s403_s9, %s441_s12  ;;  %p57_p0 = scmp.ne.s32.totalorder %s399_s8, %s395_s7 }
   0x6   : > { %p45_p1 = scmp.eq.s32.totalorder %s44_s14, 0  ;;  %p58_p2 = scmp.eq.s32.totalorder %s437_s10, 1 }
   0x7   : > { %p63_p3 = scmp.ne.s32.totalorder %s395_s7, %s391_s6  ;;  %p64_p4 = scmp.eq.s32.totalorder %s290_s11, 1 }
   0x8   : > { %s452_s15 = scalar_select %p45_p1, %s399_s8, %s47_s13  }
   0x9   : > { %p454_p5 = por %p58_p2, %p57_p0  ;;  %p458_p6 = por %p64_p4, %p63_p3 }
   0xa   : > { %p293_p7 = scmp.ge.s32.totalorder %s403_s9, 1  ;;  %p90_p8 = scmp.lt.s32.totalorder %s403_s9, 3 }
   0xc   : > { %p91_p9 = pnand %p293_p7, %p90_p8 }
   0xd   : > { %p110_p10 = scmp.lt.s32.totalorder (!%p91_p9), %s437_s10, 1  ;;  %s107_s23 = sand.u32 (!%p91_p9), 1, %s395_s7  }
   0xe   : > { %94 = sbr.rel (%p91_p9) target bundleno = 165 (0xa5), region = 24  ;;  %s294_s24 = sshll.u32 (!%p91_p9), %s107_s23, 3 }
   0xf   : > { %s303_s25 = sshll.u32 (!%p91_p9), %s437_s10, 7  ;;  %s109_s26 = scalar_lea.vmem (!%p91_p9), [#allocation2], %s294_s24 }
  0x10   : > { %s231_s27 = sshll.u32 (!%p91_p9), %s109_s26, 4  ;;  %s229_s30 = scalar_lea.hbm (!%p91_p9), %s538_s1, %s303_s25  ;;  %s232_s27 = int_to_ptr.vmem [resolvable:$true] %s231_s27 }
  0x11   : > { %s217_s2 = scalar_lea.sflag (!%p91_p9), [#allocation3], %s107_s23  ;;  %s343_s3 = scalar_lea.vmem (!%p91_p9), %s232_s27, 128 }
  0x12   : > { %p344_p11 = scmp.ne.s32.totalorder (!%p91_p9), %s232_s27, %s343_s3  ;;  %s405_s4 = smov (!%p91_p9), [#allocation2]  }
  0x13   : > { %s111_s18 = scalar_select %p110_p10, %s437_s10, 1 }
  0x14   : > { %p345_p12 = pnand %p344_p11, %p454_p5  ;;  %s347_s5 = sshll.u32 %s405_s4, 4  ;;  %s348_s5 = int_to_ptr.vmem [resolvable:$false] %s347_s5 }
  0x15   : > { %s302_s19 = sshll.u32 %s111_s18, 8  ;;  %s349_s10 = scalar_lea.vmem %s348_s5, 256 }
  0x16   : > { %s469_s22 = scalar_lea.vmem %s537_s0, %s302_s19  ;;  %p346_p13 = pneg %p345_p12 }
  0x17   : > { %v131_v0 = vld [vmem:[%s469_s22 + $0x80] sm:$0xff]  ;;  %v132_v2 = vld [vmem:[%s469_s22 + $0x88] sm:$0xff]  ;;  %v133_v4 = vld [vmem:[%s469_s22 + $0x90] sm:$0xff]  ;;  %p350_p0 = scmp.lt.s32.totalorder %s232_s27, %s348_s5  ;;  %p351_p1 = scmp.lt.s32.totalorder %s349_s10, %s343_s3 }
  0x18   : > { %v115_v1 = vld [vmem:[%s469_s22] sm:$0xff]  ;;  %179 = vxpose.xlu1.b32.start [1/16] (narrow) %v131_v0, 8  ;;  %v116_v3 = vld [vmem:[%s469_s22 + $0x8] sm:$0xff]  ;;  %v117_v5 = vld [vmem:[%s469_s22 + $0x10] sm:$0xff] }
  0x19   : > { %147 = vxpose.xlu0.b32.start [1/16] (narrow) %v115_v1, 8  ;;  %v134_v6 = vld [vmem:[%s469_s22 + $0x98] sm:$0xff]  ;;  %v135_v8 = vld [vmem:[%s469_s22 + $0xa0] sm:$0xff]  ;;  %v136_v10 = vld [vmem:[%s469_s22 + $0xa8] sm:$0xff]  ;;  %p352_p2 = por %p351_p1, %p350_p0 }
  0x1a   : > { %v118_v7 = vld [vmem:[%s469_s22 + $0x18] sm:$0xff]  ;;  %v119_v9 = vld [vmem:[%s469_s22 + $0x20] sm:$0xff]  ;;  %v120_v11 = vld [vmem:[%s469_s22 + $0x28] sm:$0xff] }
  0x1b   : > { %v137_v12 = vld [vmem:[%s469_s22 + $0xb0] sm:$0xff]  ;;  %v138_v14 = vld [vmem:[%s469_s22 + $0xb8] sm:$0xff]  ;;  %v139_v16 = vld [vmem:[%s469_s22 + $0xc0] sm:$0xff]  ;;  %p353_p3 = pnand %p352_p2, %p346_p13 }
  0x1c   : > { %180 = vxpose.xlu1.b32.cont [2/16] (narrow) %v132_v2, 8  ;;  %v121_v13 = vld [vmem:[%s469_s22 + $0x30] sm:$0xff]  ;;  %v122_v15 = vld [vmem:[%s469_s22 + $0x38] sm:$0xff]  ;;  %v123_v17 = vld [vmem:[%s469_s22 + $0x40] sm:$0xff] }
  0x1d   : > { %148 = vxpose.xlu0.b32.cont [2/16] (narrow) %v116_v3, 8  ;;  %v140_v18 = vld [vmem:[%s469_s22 + $0xc8] sm:$0xff]  ;;  %v141_v20 = vld [vmem:[%s469_s22 + $0xd0] sm:$0xff]  ;;  %v142_v22 = vld [vmem:[%s469_s22 + $0xd8] sm:$0xff] }
  0x1e   : > { %v124_v19 = vld [vmem:[%s469_s22 + $0x48] sm:$0xff]  ;;  %v125_v21 = vld [vmem:[%s469_s22 + $0x50] sm:$0xff]  ;;  %v126_v23 = vld [vmem:[%s469_s22 + $0x58] sm:$0xff] }
  0x1f   : > { %v143_v24 = vld [vmem:[%s469_s22 + $0xe0] sm:$0xff]  ;;  %v144_v26 = vld [vmem:[%s469_s22 + $0xe8] sm:$0xff]  ;;  %v145_v28 = vld [vmem:[%s469_s22 + $0xf0] sm:$0xff] }
  0x20   : > { %181 = vxpose.xlu1.b32.cont [3/16] (narrow) %v133_v4, 8  ;;  %v127_v25 = vld [vmem:[%s469_s22 + $0x60] sm:$0xff]  ;;  %v128_v27 = vld [vmem:[%s469_s22 + $0x68] sm:$0xff]  ;;  %v129_v29 = vld [vmem:[%s469_s22 + $0x70] sm:$0xff] }
  0x21   : > { %149 = vxpose.xlu0.b32.cont [3/16] (narrow) %v117_v5, 8  ;;  %v146_v30 = vld [vmem:[%s469_s22 + $0xf8] sm:$0xff] }
  0x22   : > { %v130_v31 = vld [vmem:[%s469_s22 + $0x78] sm:$0xff] }
  0x24   : > { %182 = vxpose.xlu1.b32.cont [4/16] (narrow) %v134_v6, 8 }
  0x25   : > { %150 = vxpose.xlu0.b32.cont [4/16] (narrow) %v118_v7, 8 }
  0x28   : > { %183 = vxpose.xlu1.b32.cont [5/16] (narrow) %v135_v8, 8 }
  0x29   : > { %151 = vxpose.xlu0.b32.cont [5/16] (narrow) %v119_v9, 8 }
  0x2c   : > { %184 = vxpose.xlu1.b32.cont [6/16] (narrow) %v136_v10, 8 }
  0x2d   : > { %152 = vxpose.xlu0.b32.cont [6/16] (narrow) %v120_v11, 8 }
  0x30   : > { %185 = vxpose.xlu1.b32.cont [7/16] (narrow) %v137_v12, 8 }
  0x31   : > { %153 = vxpose.xlu0.b32.cont [7/16] (narrow) %v121_v13, 8 }
  0x34   : > { %186 = vxpose.xlu1.b32.cont [8/16] (narrow) %v138_v14, 8 }
  0x35   : > { %154 = vxpose.xlu0.b32.cont [8/16] (narrow) %v122_v15, 8 }
  0x38   : > { %187 = vxpose.xlu1.b32.cont [9/16] (narrow) %v139_v16, 8 }
  0x39   : > { %155 = vxpose.xlu0.b32.cont [9/16] (narrow) %v123_v17, 8 }
  0x3c   : > { %188 = vxpose.xlu1.b32.cont [10/16] (narrow) %v140_v18, 8 }
  0x3d   : > { %156 = vxpose.xlu0.b32.cont [10/16] (narrow) %v124_v19, 8 }
  0x40   : > { %189 = vxpose.xlu1.b32.cont [11/16] (narrow) %v141_v20, 8 }
  0x41   : > { %157 = vxpose.xlu0.b32.cont [11/16] (narrow) %v125_v21, 8 }
  0x44   : > { %190 = vxpose.xlu1.b32.cont [12/16] (narrow) %v142_v22, 8 }
  0x45   : > { %158 = vxpose.xlu0.b32.cont [12/16] (narrow) %v126_v23, 8 }
  0x48   : > { %191 = vxpose.xlu1.b32.cont [13/16] (narrow) %v143_v24, 8 }
  0x49   : > { %159 = vxpose.xlu0.b32.cont [13/16] (narrow) %v127_v25, 8 }
  0x4c   : > { %192 = vxpose.xlu1.b32.cont [14/16] (narrow) %v144_v26, 8 }
  0x4d   : > { %160 = vxpose.xlu0.b32.cont [14/16] (narrow) %v128_v27, 8 }
  0x50   : > { %193 = vxpose.xlu1.b32.cont [15/16] (narrow) %v145_v28, 8 }
  0x51   : > { %161 = vxpose.xlu0.b32.cont [15/16] (narrow) %v129_v29, 8 }
  0x54   : > { %194 = vxpose.xlu1.b32.end [16/16] (narrow) %v146_v30, 8 }
  0x55   : > { %162 = vxpose.xlu0.b32.end [16/16] (narrow) %v130_v31, 8 }
  0x94   : > { %v195_v32 = vpop.trf.xlu1 }
  0x95   : > { %v163_v33 = vpop.trf.xlu0 }
  0x96   : > { %v213_v34 = vcombine.low %v163_v33, %v195_v32 }
  0x98   : > { %215 = vst [vmem:[%s109_s26] sm:$0xff] %v213_v34 }
  0x99   : > { %356 = shalt.err (!%p353_p3)
}
  0x9a   : > { %s357_s11 = scalar_lea.hbm %s229_s30, 128  ;;  %s361_s18 = scalar_lea.hbm %s538_s1, 256 }
  0x9b   : > { %p358_p4 = scmp.ne.s32.totalorder %s229_s30, %s357_s11  ;;  %p362_p9 = scmp.lt.s32.totalorder %s229_s30, %s538_s1 }
  0x9c   : > { %p363_p10 = scmp.lt.s32.totalorder %s361_s18, %s357_s11 }
  0x9d   : > { %p359_p7 = pnand %p358_p4, %p454_p5 }
  0x9e   : > { %p364_p11 = por %p363_p10, %p362_p9 }
  0x9f   : > { %p360_p8 = pneg %p359_p7 }
  0xa1   : > { %p365_p12 = pnand %p364_p11, %p360_p8 }
  0xa3   : > { %368 = shalt.err (!%p365_p12)
}
  0xa4   : > { %304 = dma.vmem_to_hbm [thread:$0]  (%p454_p5), %s232_s27, 128, %s229_s30, %s217_s2  }
  0xa5 PF: > { %p310_p13 = scmp.ge.s32.totalorder %s403_s9, 2  ;;  %s243_s21 = sand.u32 1, %s391_s6  }
  0xa6   : > { %s244_s22 = scalar_lea.sflag [#allocation3], %s243_s21 }
  0xa7   : > { %p307_p0 = pnand %p310_p13, %p458_p6 }
  0xa9   : > { %p308_p1 = pneg %p307_p0 }
  0xab   : > { %386 = dma.done.wait (%p308_p1), %s244_s22, 128  }
  0xac   : > { %388 = vsyncadd (%p308_p1), %s244_s22, 4294967168  ;;  %p11_p2 = scmp.ge.s32.totalorder %s441_s12, 4   ;;  %s541_s6 = smov %s395_s7 }
  0xad   : > { %s542_s7 = smov %s399_s8  ;;  %s543_s8 = smov %s452_s15 }
  0xae   : > { %s544_s9 = smov %s441_s12  ;;  %13 = sbr.rel (!%p11_p2) target bundleno = 3 (0x3), region = 59 }
  0xb3   :  { %249 = vsyncpa [#allocation3], 1 }
  0xb4   :  { %251 = vsyncpa [#allocation3 + $0x1], 1 }

</bundles_post_ra>
